<compile_context>
chip_gen: v7x
topology: tpu7x:2x2x1
jax: 0.10.0
libtpu: 0.0.40
codegen_flags: <defaults>
</compile_context>

<pallas_src>
import math

import jax
import jax.numpy as jnp
import numpy as np
from jax.experimental import pallas as pl
from jax.experimental.pallas import tpu as pltpu

# ----------------------------------------------------------------------------
# Irreps definition (irreps_in = "8x0e + 4x1o + 2x2e")
# ----------------------------------------------------------------------------
SCALAR_MUL = 8                         # 8x0e  -> scalar_idx = 8
VECTOR_IRREPS = [(4, 1), (2, 2)]       # (mul, l): 4x1o (dim 3), 2x2e (dim 5)

D_POINT = SCALAR_MUL + sum(m * (2 * l + 1) for m, l in VECTOR_IRREPS)   # 30
U = sum(m for m, _ in VECTOR_IRREPS)                                    # 6
EPS = 1e-8

PACK = 8                     # points packed per row -> 240 lanes (93.75% lane-dense)
W = PACK * D_POINT           # 240 (packed feature width)
UG = PACK * U                # 48  (packed vector-channel count)
MAX_TILE_ROWS = 2048         # packed rows per grid step (~1.9 MiB per f32 block)


def _cdiv(a: int, b: int) -> int:
    return -(-a // b)


def _round_up(v: int, m: int) -> int:
    return ((v + m - 1) // m) * m


def _build_constants():
    """Block-diagonal selectors + scalar-column mask for the packed layout.

    p_fwd   (W, UG): squared features -> per-channel inner product / sqrt(2l+1)
    p_bcast (UG, W): per-channel gate -> broadcast over that channel's components
    scal_mask (1, W): 1.0 at scalar (0e) columns, 0.0 elsewhere
    """
    p_fwd = np.zeros((W, UG), np.float32)
    p_bcast = np.zeros((UG, W), np.float32)
    scal_mask = np.zeros((1, W), np.float32)
    for p in range(PACK):
        base = p * D_POINT
        scal_mask[0, base:base + SCALAR_MUL] = 1.0
        col = base + SCALAR_MUL
        ch = p * U
        for mul, l in VECTOR_IRREPS:
            d = 2 * l + 1
            inv_sqrt_d = 1.0 / math.sqrt(d)
            for u in range(mul):
                rows = slice(col + u * d, col + (u + 1) * d)
                p_fwd[rows, ch + u] = inv_sqrt_d
                p_bcast[ch + u, rows] = 1.0
            col += mul * d
            ch += mul
    return jnp.asarray(p_fwd), jnp.asarray(p_bcast), jnp.asarray(scal_mask)


# ----------------------------------------------------------------------------
# Pallas kernel: full-width compute, single full-width store per tile.
# ----------------------------------------------------------------------------
def _norm_act_kernel(x_ref, pfwd_ref, pbcast_ref, smask_ref, o_ref):
    x = x_ref[...].astype(jnp.float32)                                    # (TN, W)
    s2 = x * x
    # Per-channel normalized inner products via a tiny MXU matmul
    # (kernel is HBM-bound; these FLOPs are negligible on all generations).
    inner = jnp.dot(s2, pfwd_ref[...], preferred_element_type=jnp.float32)      # (TN, UG)
    gate = jax.nn.sigmoid(jnp.sqrt(inner + EPS))                                # (TN, UG)
    gate_full = jnp.dot(gate, pbcast_ref[...],
                        preferred_element_type=jnp.float32)                     # (TN, W)
    # Scalar columns: silu(x) = x * sigmoid(x); vector columns: x * gate.
    # gate_full is exactly 0 at scalar columns (no P_bcast support there) and the
    # mask is exactly 0 at vector columns, so an arithmetic blend is exact.
    m = smask_ref[...]                                                    # (1, W) {0,1}
    gate_all = m * jax.nn.sigmoid(x) + gate_full                          # (TN, W)
    o_ref[...] = (x * gate_all).astype(o_ref.dtype)


# ----------------------------------------------------------------------------
# Wrapper: zero-copy packing, padding for arbitrary N, large parallel tiles.
# ----------------------------------------------------------------------------
def _norm_activation_impl(features: jax.Array) -> jax.Array:
    n, feat = features.shape
    assert feat == D_POINT, f"expected feature width {D_POINT}, got {feat}"
    p_fwd, p_bcast, scal_mask = _build_constants()

    rows = _cdiv(n, PACK)
    # >= 2 grid steps when there is enough work (v7x has 2 TensorCores), rounded to a
    # sublane-aligned multiple of 8, capped so double-buffered in+out stays ~8 MiB.
    tn = min(MAX_TILE_ROWS, _round_up(max(rows // 2, 1), 8))
    grid = _cdiv(rows, tn)
    padded_rows = grid * tn
    padded_n = padded_rows * PACK

    x = features
    if padded_n != n:
        x = jnp.pad(x, ((0, padded_n - n), (0, 0)))
    # Row-major reinterpretation (N, 30) -> (N/8, 240): same HBM bytes, no copy.
    x_packed = x.reshape(padded_rows, W)

    out_packed = pl.pallas_call(
        _norm_act_kernel,
        out_shape=jax.ShapeDtypeStruct((padded_rows, W), features.dtype),
        grid_spec=pltpu.PrefetchScalarGridSpec(
            num_scalar_prefetch=0,
            grid=(grid,),
            in_specs=[
                pl.BlockSpec((tn, W), lambda i: (i, 0)),
                pl.BlockSpec((W, UG), lambda i: (0, 0)),   # constant block: fetched once
                pl.BlockSpec((UG, W), lambda i: (0, 0)),   # constant block: fetched once
                pl.BlockSpec((1, W), lambda i: (0, 0)),    # constant block: fetched once
            ],
            out_specs=pl.BlockSpec((tn, W), lambda i: (i, 0)),
        ),
        compiler_params=pltpu.CompilerParams(
            dimension_semantics=("parallel",),
            vmem_limit_bytes=32 * 1024 * 1024,
        ),
    )(x_packed, p_fwd, p_bcast, scal_mask)

    out = out_packed.reshape(padded_n, D_POINT)
    if padded_n != n:
        out = out[:n]
    return out


norm_activation = jax.jit(_norm_activation_impl)


# ----------------------------------------------------------------------------
# Pure-JAX reference (mirrors the PyTorch/e3nn forward exactly)
# ----------------------------------------------------------------------------
def norm_activation_ref(features: jax.Array) -> jax.Array:
    outs = [jax.nn.silu(features[:, :SCALAR_MUL])]
    off = SCALAR_MUL
    for mul, l in VECTOR_IRREPS:
        d = 2 * l + 1
        v = features[:, off:off + mul * d].reshape(-1, mul, d)
        inner = jnp.sum(v * v, axis=-1) / jnp.sqrt(jnp.float32(d))
        gate = jax.nn.sigmoid(jnp.sqrt(inner + EPS))
        outs.append((gate[..., None] * v).reshape(-1, mul * d))
        off += mul * d
    return jnp.concatenate(outs, axis=-1)


if __name__ == "__main__":
    key = jax.random.PRNGKey(0)
    # Small shapes: n=16 (heavy padding path), n=1000 (ragged, 2 grid steps).
    for n in (16, 1000):
        x = jax.random.normal(jax.random.fold_in(key, n), (n, D_POINT),
                              dtype=jnp.float32)
        out = jax.block_until_ready(norm_activation(x))
        ref = jax.block_until_ready(norm_activation_ref(x))
        assert out.shape == (n, D_POINT) and out.dtype == jnp.float32
        np.testing.assert_allclose(np.asarray(out), np.asarray(ref),
                                   rtol=1e-5, atol=1e-5)
    print("KERNEL_OK")
</pallas_src>

<mosaic_0001>
module attributes {stable_mosaic.version = 11 : i64} {
  func.func @_norm_act_kernel(%arg0: i32, %arg1: memref<8x240xf32, #tpu.memory_space<vmem>>, %arg2: memref<240x48xf32, #tpu.memory_space<vmem>>, %arg3: memref<48x240xf32, #tpu.memory_space<vmem>>, %arg4: memref<1x240xf32, #tpu.memory_space<vmem>>, %arg5: memref<8x240xf32, #tpu.memory_space<vmem>>) attributes {dimension_semantics = [#tpu.dimension_semantics<parallel>], iteration_bounds = array<i64: 1>, scalar_prefetch = 0 : i64, scratch_operands = 0 : i64, tpu.core_type = #tpu.core_type<tc>, window_params = [{transform_indices = @transform_0, window_bounds = array<i64: 8, 240>}, {pipeline_mode = #tpu.pipeline_mode<synchronous>, transform_indices = @transform_1, window_bounds = array<i64: 240, 48>}, {pipeline_mode = #tpu.pipeline_mode<synchronous>, transform_indices = @transform_2, window_bounds = array<i64: 48, 240>}, {pipeline_mode = #tpu.pipeline_mode<synchronous>, transform_indices = @transform_3, window_bounds = array<i64: 1, 240>}, {transform_indices = @transform_4, window_bounds = array<i64: 8, 240>}]} {
    %c0 = arith.constant 0 : index
    %c0_0 = arith.constant 0 : index
    %0 = vector.load %arg1[%c0, %c0_0] : memref<8x240xf32, #tpu.memory_space<vmem>>, vector<8x240xf32>
    %1 = arith.mulf %0, %0 : vector<8x240xf32>
    %c0_1 = arith.constant 0 : index
    %c0_2 = arith.constant 0 : index
    %2 = vector.load %arg2[%c0_1, %c0_2] : memref<240x48xf32, #tpu.memory_space<vmem>>, vector<240x48xf32>
    %cst = arith.constant dense<0.000000e+00> : vector<8x48xf32>
    %3 = tpu.matmul %1, %2, %cst {dimension_numbers = #tpu.dot_dimension_numbers<[1], [0], [0], [1], [0, 0, 1, 1], [], []>} : vector<8x240xf32>, vector<240x48xf32>, vector<8x48xf32> -> vector<8x48xf32>
    %cst_3 = arith.constant 9.99999993E-9 : f32
    %4 = vector.broadcast %cst_3 : f32 to vector<8x48xf32>
    %5 = arith.addf %3, %4 : vector<8x48xf32>
    %6 = math.sqrt %5 : vector<8x48xf32>
    %7 = arith.negf %6 : vector<8x48xf32>
    %8 = math.exp %7 : vector<8x48xf32>
    %cst_4 = arith.constant 1.000000e+00 : f32
    %9 = vector.broadcast %cst_4 : f32 to vector<8x48xf32>
    %10 = arith.addf %9, %8 : vector<8x48xf32>
    %11 = arith.divf %9, %10 : vector<8x48xf32>
    %c0_5 = arith.constant 0 : index
    %c0_6 = arith.constant 0 : index
    %12 = vector.load %arg3[%c0_5, %c0_6] : memref<48x240xf32, #tpu.memory_space<vmem>>, vector<48x240xf32>
    %cst_7 = arith.constant dense<0.000000e+00> : vector<8x240xf32>
    %13 = tpu.matmul %11, %12, %cst_7 {dimension_numbers = #tpu.dot_dimension_numbers<[1], [0], [0], [1], [0, 0, 1, 1], [], []>} : vector<8x48xf32>, vector<48x240xf32>, vector<8x240xf32> -> vector<8x240xf32>
    %c0_8 = arith.constant 0 : index
    %c0_9 = arith.constant 0 : index
    %14 = vector.load %arg4[%c0_8, %c0_9] : memref<1x240xf32, #tpu.memory_space<vmem>>, vector<1x240xf32>
    %15 = arith.negf %0 : vector<8x240xf32>
    %16 = math.exp %15 : vector<8x240xf32>
    %cst_10 = arith.constant 1.000000e+00 : f32
    %17 = vector.broadcast %cst_10 : f32 to vector<8x240xf32>
    %18 = arith.addf %17, %16 : vector<8x240xf32>
    %19 = arith.divf %17, %18 : vector<8x240xf32>
    %20 = vector.broadcast %14 : vector<1x240xf32> to vector<8x240xf32>
    %21 = arith.mulf %20, %19 : vector<8x240xf32>
    %22 = arith.addf %21, %13 : vector<8x240xf32>
    %23 = arith.mulf %0, %22 : vector<8x240xf32>
    %c0_11 = arith.constant 0 : index
    %c0_12 = arith.constant 0 : index
    %24 = vector.load %arg5[%c0_11, %c0_12] : memref<8x240xf32, #tpu.memory_space<vmem>>, vector<8x240xf32>
    tpu.vector_store %arg5[%c0_11, %c0_12], %23 {strides = array<i32>} : memref<8x240xf32, #tpu.memory_space<vmem>>, vector<8x240xf32>,
    return
  }
  func.func @transform_0(%arg0: i32) -> (i32, i32) {
    %c0_i32 = arith.constant 0 : i32
    %c0_i32_0 = arith.constant 0 : i32
    return %arg0, %c0_i32 : i32, i32
  }
  func.func @transform_1(%arg0: i32) -> (i32, i32) {
    %c0_i32 = arith.constant 0 : i32
    %c0_i32_0 = arith.constant 0 : i32
    %c0_i32_1 = arith.constant 0 : i32
    return %c0_i32, %c0_i32_0 : i32, i32
  }
  func.func @transform_2(%arg0: i32) -> (i32, i32) {
    %c0_i32 = arith.constant 0 : i32
    %c0_i32_0 = arith.constant 0 : i32
    %c0_i32_1 = arith.constant 0 : i32
    return %c0_i32, %c0_i32_0 : i32, i32
  }
  func.func @transform_3(%arg0: i32) -> (i32, i32) {
    %c0_i32 = arith.constant 0 : i32
    %c0_i32_0 = arith.constant 0 : i32
    %c0_i32_1 = arith.constant 0 : i32
    return %c0_i32, %c0_i32_0 : i32, i32
  }
  func.func @transform_4(%arg0: i32) -> (i32, i32) {
    %c0_i32 = arith.constant 0 : i32
    %c0_i32_0 = arith.constant 0 : i32
    return %arg0, %c0_i32 : i32, i32
  }
}

</mosaic_0001>

<bundles_post_ra>
// kernel: _norm_activation_impl.1
= control target key start
LH: loop header
LB: loop body
LE: loop exit
PB: predicated region body
PF: predicated region fallthrough
CT: control target
= control target key end

     0   :  { %9 = vsyncpa [#allocation3], 0  ;;  %s381_s15 = smov [#allocation2]   ;;  %s503_s0 = inlined_call_operand.vmem [shape: f32[8,240], index: 0, kind: input, shape index: {}]   ;;  %s504_s1 = inlined_call_operand.hbm [shape: f32[240,48], index: 1, kind: input, shape index: {}]   ;;  %s505_s2 = inlined_call_operand.vmem [shape: f32[48,240], index: 2, kind: input, shape index: {}]   ;;  %s506_s3 = inlined_call_operand.vmem [shape: f32[1,240], index: 3, kind: input, shape index: {}]   ;;  %s507_s4 = inlined_call_operand.vmem [shape: f32[8,240], index: 4, kind: output, shape index: {}]  }
   0x1   :  { %s17_s16 = sshll.u32 %s381_s15, 4  ;;  %s357_s19 = scalar_lea.hbm %s504_s1, 3840  ;;  %s18_s16 = int_to_ptr.vmem [resolvable:$true] %s17_s16 }
   0x2   :  { %p358_p0 = scmp.ne.s32.totalorder %s504_s1, %s357_s19  ;;  %p361_p1 = scmp.lt.u32.totalorder %s357_s19, %s504_s1 }
   0x4   :  { %p363_p2 = pnand %p361_p1, %p358_p0 }
   0x6   :  { %366 = shalt.err (!%p363_p2)
}
   0x7   :  { %s367_s24 = scalar_lea.vmem %s18_s16, 3840  ;;  %p372_p4 = scmp.lt.s32.totalorder %s18_s16, %s18_s16 }
   0x8   :  { %p368_p3 = scmp.ne.s32.totalorder %s18_s16, %s367_s24  ;;  %p373_p5 = scmp.lt.s32.totalorder %s367_s24, %s367_s24 }
   0xa   :  { %p374_p6 = por %p373_p5, %p372_p4 }
   0xc   :  { %p375_p7 = pnand %p374_p6, %p368_p3 }
   0xe   :  { %378 = shalt.err (!%p375_p7)
}
   0xf   :  { %s382_s25 = smov 128   ;;  %s383_s26 = smov 8  }
  0x10   :  { %23 = dma.hbm_to_vmem [thread:$0]  %s504_s1, 3840, %s18_s16, [#allocation3], %s382_s25, %s382_s25, %s383_s26  }
  0x11   :  { %379 = dma.done.wait [#allocation3], 3840  }
  0x12   :  { %380 = vsyncadd [#allocation3], 4294963456  ;;  %v384_v0 = vmov 0.0|0.0   ;;  %v35_v1 = vld [vmem:[#allocation2] sm:$0xff]  ;;  %v36_v2 = vld [vmem:[#allocation2 + $0x8] sm:$0xff]  ;;  %vm65_vm0 = vcmask 916480  }
  0x13   :  { %281 = vmatprep.subr.bf16.mxu0 %v384_v0  ;;  %v37_v3 = vld [vmem:[#allocation2 + $0x10] sm:$0xff]  ;;  %v282_v4 = vpack.c.bf16 %v36_v2, %v35_v1  ;;  %v38_v5 = vld [vmem:[#allocation2 + $0x18] sm:$0xff]  ;;  %v39_v7 = vld [vmem:[#allocation2 + $0x20] sm:$0xff]  ;;  %v385_v63 = vmov 0.0   ;;  %vm164_vm3 = vcmask 392192  }
  0x14   :  { %v285_v6 = vpack.c.bf16 %v38_v5, %v37_v3  ;;  %v40_v8 = vld [vmem:[#allocation2 + $0x28] sm:$0xff]  ;;  %v41_v10 = vld [vmem:[#allocation2 + $0x30] sm:$0xff]  ;;  %v42_v11 = vld [vmem:[#allocation2 + $0x38] sm:$0xff]  ;;  %232 = vmatprep.mubr.f32.mxu1 %v385_v63 }
  0x15   :  { %283 = vmatpush1.bf16.msra.mxu0 %v282_v4  ;;  %v288_v9 = vpack.c.bf16 %v40_v8, %v39_v7  ;;  %v429_v12 = vld [vmem:[%s503_s0 + $0x8] sm:$0xff]  ;;  %v291_v13 = vpack.c.bf16 %v42_v11, %v41_v10  ;;  %v43_v15 = vld [vmem:[#allocation2 + $0x40] sm:$0xff]  ;;  %v45_v18 = vld [vmem:[#allocation2 + $0x50] sm:$0xff] }
  0x16   :  { %284 = vmatprep.subr.bf16.mxu0 %v384_v0  ;;  %v34_v14 = vmul.f32 %v429_v12, %v429_v12  ;;  %v44_v16 = vld [vmem:[#allocation2 + $0x48] sm:$0xff]  ;;  %v46_v19 = vld [vmem:[#allocation2 + $0x58] sm:$0xff]  ;;  %v47_v21 = vld [vmem:[#allocation2 + $0x60] sm:$0xff] }
  0x17   :  { %v294_v17 = vpack.c.bf16 %v44_v16, %v43_v15  ;;  %v297_v20 = vpack.c.bf16 %v46_v19, %v45_v18  ;;  %v48_v22 = vld [vmem:[#allocation2 + $0x68] sm:$0xff]  ;;  %v49_v24 = vld [vmem:[#allocation2 + $0x70] sm:$0xff]  ;;  %v50_v25 = vld [vmem:[#allocation2 + $0x78] sm:$0xff]  ;;  %v280_v19 = vmul.f32 -1.442695, %v429_v12 }
  0x18   :  { %276 = vmatprep.mubr.msk.f32.mxu0 %vm65_vm0, %v34_v14  ;;  %v300_v23 = vpack.c.bf16 %v48_v22, %v47_v21  ;;  %v303_v26 = vpack.c.bf16 %v50_v25, %v49_v24  ;;  %v51_v27 = vld [vmem:[#allocation2 + $0x80] sm:$0xff]  ;;  %v52_v28 = vld [vmem:[#allocation2 + $0x88] sm:$0xff]  ;;  %v53_v30 = vld [vmem:[#allocation2 + $0x90] sm:$0xff]  ;;  %v253_v24 = vlaneseq }
  0x19   :  { %286 = vmatpush1.bf16.msra.mxu0 %v285_v6  ;;  %v306_v29 = vpack.c.bf16 %v52_v28, %v51_v27  ;;  %v54_v31 = vld [vmem:[#allocation2 + $0x98] sm:$0xff]  ;;  %v55_v33 = vld [vmem:[#allocation2 + $0xa0] sm:$0xff]  ;;  %v56_v34 = vld [vmem:[#allocation2 + $0xa8] sm:$0xff] }
  0x1a   :  { %287 = vmatprep.subr.bf16.mxu0 %v384_v0  ;;  %v309_v32 = vpack.c.bf16 %v54_v31, %v53_v30  ;;  %v312_v35 = vpack.c.bf16 %v56_v34, %v55_v33  ;;  %v57_v36 = vld [vmem:[#allocation2 + $0xb0] sm:$0xff]  ;;  %v58_v37 = vld [vmem:[#allocation2 + $0xb8] sm:$0xff]  ;;  %v59_v39 = vld [vmem:[#allocation2 + $0xc0] sm:$0xff]  ;;  %v254_v25 = vshrl.u32 %v253_v24, 7 }
  0x1b   :  { %v315_v38 = vpack.c.bf16 %v58_v37, %v57_v36  ;;  %v60_v40 = vld [vmem:[#allocation2 + $0xc8] sm:$0xff]  ;;  %v61_v42 = vld [vmem:[#allocation2 + $0xd0] sm:$0xff]  ;;  %v62_v43 = vld [vmem:[#allocation2 + $0xd8] sm:$0xff] }
  0x1c   :  { %v318_v41 = vpack.c.bf16 %v60_v40, %v59_v39  ;;  %v321_v44 = vpack.c.bf16 %v62_v43, %v61_v42  ;;  %v63_v45 = vld [vmem:[#allocation2 + $0xe0] sm:$0xff]  ;;  %v64_v46 = vld [vmem:[#allocation2 + $0xe8] sm:$0xff]  ;;  %v155_v51 = vld [vmem:[%s505_s2 + $0x18] sm:$0xff]  ;;  %v259_v28 = vsub.s32 1, %v254_v25 }
  0x1d   :  { %289 = vmatpush1.bf16.msra.mxu0 %v288_v9  ;;  %v324_v47 = vpack.c.bf16 %v64_v46, %v63_v45  ;;  %v448_v48 = vld [vmem:[%s503_s0] sm:$0xff]  ;;  %v153_v50 = vld [vmem:[%s505_s2 + $0x8] sm:$0xff]  ;;  %v154_v54 = vld [vmem:[%s505_s2 + $0x10] sm:$0xff] }
  0x1e   :  { %290 = vmatprep.subr.bf16.mxu0 %v384_v0  ;;  %v33_v49 = vmul.f32 %v448_v48, %v448_v48  ;;  %v326_v52 = vpack.c.bf16 %v155_v51, %v153_v50  ;;  %v152_v53 = vld [vmem:[%s505_s2] sm:$0xff]  ;;  %v157_v56 = vld [vmem:[%s505_s2 + $0x28] sm:$0xff]  ;;  %v159_v57 = vld [vmem:[%s505_s2 + $0x38] sm:$0xff]  ;;  %v279_v18 = vmul.f32 -1.442695, %v448_v48 }
  0x1f   :  { %v328_v55 = vpack.c.bf16 %v154_v54, %v152_v53  ;;  %v156_v58 = vld [vmem:[%s505_s2 + $0x20] sm:$0xff]  ;;  %v330_v59 = vpack.c.bf16 %v159_v57, %v157_v56  ;;  %v158_v60 = vld [vmem:[%s505_s2 + $0x30] sm:$0xff]  ;;  %v161_v61 = vld [vmem:[%s505_s2 + $0x48] sm:$0xff] }
  0x20   :  { %327 = vmatprep.subr.bf16.mxu1 %v326_v52  ;;  %v163_v62 = vld [vmem:[%s505_s2 + $0x58] sm:$0xff]  ;;  %v160_v2 = vld [vmem:[%s505_s2 + $0x40] sm:$0xff]  ;;  %v162_v3 = vld [vmem:[%s505_s2 + $0x50] sm:$0xff] }
  0x21   :  { %292 = vmatpush1.bf16.msra.mxu0 %v291_v13  ;;  %329 = vmatpush1.bf16.msra.mxu1 %v328_v55  ;;  %v334_v1 = vpack.c.bf16 %v163_v62, %v161_v61  ;;  %v336_v4 = vpack.c.bf16 %v162_v3, %v160_v2  ;;  %v239_v27 = vld [vmem:[%s506_s3] sm:$0x3] }
  0x22   :  { %293 = vmatprep.subr.bf16.mxu0 %v384_v0  ;;  %331 = vmatprep.subr.bf16.mxu1 %v330_v59  ;;  %v260_v31 = vrot.slane %v239_v27, %v259_v28 }
  0x25   :  { %295 = vmatpush1.bf16.msra.mxu0 %v294_v17 }
  0x26   :  { %296 = vmatprep.subr.bf16.mxu0 %v384_v0 }
  0x29   :  { %298 = vmatpush1.bf16.msra.mxu0 %v297_v20 }
  0x2a   :  { %299 = vmatprep.subr.bf16.mxu0 %v384_v0 }
  0x2d   :  { %301 = vmatpush1.bf16.msra.mxu0 %v300_v23 }
  0x2e   :  { %302 = vmatprep.subr.bf16.mxu0 %v384_v0 }
  0x31   :  { %304 = vmatpush1.bf16.msra.mxu0 %v303_v26  ;;  %v255_v26 = vsub.s32 0, %v254_v25 }
  0x32   :  { %305 = vmatprep.subr.bf16.mxu0 %v384_v0 }
  0x35   :  { %307 = vmatpush1.bf16.msra.mxu0 %v306_v29  ;;  %v256_v29 = vrot.slane %v239_v27, %v255_v26 }
  0x36   :  { %308 = vmatprep.subr.bf16.mxu0 %v384_v0 }
  0x39   :  { %310 = vmatpush1.bf16.msra.mxu0 %v309_v32 }
  0x3a   :  { %311 = vmatprep.subr.bf16.mxu0 %v384_v0 }
  0x3d   :  { %313 = vmatpush1.bf16.msra.mxu0 %v312_v35 }
  0x3e   :  { %314 = vmatprep.subr.bf16.mxu0 %v384_v0 }
  0x41   :  { %316 = vmatpush1.bf16.msra.mxu0 %v315_v38 }
  0x42   :  { %317 = vmatprep.subr.bf16.mxu0 %v384_v0 }
  0x45   :  { %319 = vmatpush1.bf16.msra.mxu0 %v318_v41 }
  0x46   :  { %320 = vmatprep.subr.bf16.mxu0 %v384_v0 }
  0x49   :  { %322 = vmatpush1.bf16.msra.mxu0 %v321_v44 }
  0x4a   :  { %323 = vmatprep.subr.bf16.mxu0 %v384_v0  ;;  %v332_v0 = vpack.c.bf16 %v158_v60, %v156_v58 }
  0x4c   :  { %333 = vmatpush1.bf16.msra.mxu1 %v332_v0 }
  0x4d   :  { %325 = vmatpush1.bf16.msra.mxu0 %v324_v47  ;;  %335 = vmatprep.subr.bf16.mxu1 %v334_v1 }
  0x50   :  { %134 = vmatmul.mubr.f32.vlgmr.msra.gmra.mrb[0].mxu0 %v33_v49  ;;  %337 = vmatpush1.bf16.msra.mxu1 %v336_v4 }
 0x123   :  { %v135_v5 = vpop.f32.mrb[0].mxu0 }
 0x124   :  { %v136_v6 = vadd.f32 1e-08, %v135_v5  ;;  %v137_v7 = vpop.f32.mrb[1].mxu0 }
 0x126   :  { %343 = vrsqrt.f32 %v136_v6  ;;  %vm141_vm1 = vcmp.eq.f32.partialorder %v136_v6, inf  ;;  %v144_v10 = vand.u32 2147483648, %v136_v6  ;;  %vm143_vm2 = vcmp.eq.f32.partialorder %v136_v6, 0.0 }
 0x130   :  { %v344_v8 = vpop.eup %343 }
 0x131   :  { %v140_v9 = vmul.f32 %v344_v8, %v136_v6 }
 0x133   :  { %v142_v11 = vsel %vm141_vm1, %v136_v6, %v140_v9 }
 0x134   :  { %v145_v13 = vsel %vm143_vm2, %v144_v10, %v142_v11 }
 0x135   :  { %v277_v14 = vmul.f32 -1.442695, %v145_v13 }
 0x137   :  { %345 = vpow2.f32 %v277_v14 }
 0x141   :  { %v346_v15 = vpop.eup %345 }
 0x142   :  { %v149_v16 = vadd.f32 1.0, %v346_v15 }
 0x144   :  { %347 = vrcp.f32 %v149_v16 }
 0x145   :  { %349 = vpow2.f32 %v279_v18 }
 0x146   :  { %351 = vpow2.f32 %v280_v19 }
 0x14e   :  { %v348_v17 = vpop.eup %347 }
 0x14f   :  { %278 = vmatmul.mubr.msk.f32.vlgmr.msra.gmra.mrb[0].mxu1 %vm164_vm3, %v348_v17  ;;  %v350_v20 = vpop.eup %349 }
 0x150   :  { %v352_v21 = vpop.eup %351  ;;  %v246_v22 = vadd.f32 1.0, %v350_v20 }
 0x151   :  { %v247_v23 = vadd.f32 1.0, %v352_v21 }
 0x152   :  { %353 = vrcp.f32 %v246_v22 }
 0x153   :  { %355 = vrcp.f32 %v247_v23 }
 0x15c   :  { %v354_v30 = vpop.eup %353 }
 0x15d   :  { %v356_v32 = vpop.eup %355  ;;  %v263_v33 = vmul.f32 %v354_v30, %v256_v29 }
 0x15e   :  { %v264_v34 = vmul.f32 %v356_v32, %v260_v31 }
 0x222   :  { %v234_v35 = vpop.f32.mrb[0].mxu1 }
 0x223   :  { %v265_v36 = vadd.f32 %v263_v33, %v234_v35  ;;  %v236_v37 = vpop.f32.mrb[1].mxu1 }
 0x224   :  { %v266_v38 = vadd.f32 %v264_v34, %v236_v37 }
 0x225   :  { %v267_v39 = vmul.f32 %v265_v36, %v448_v48 }
 0x226   :  { %v268_v40 = vmul.f32 %v266_v38, %v429_v12 }
 0x227   :  { %269 = vst [vmem:[%s507_s4] sm:$0xff] %v267_v39 }
 0x228   :  { %270 = vst.msk [vmem:[%s507_s4 + $0x8] sm:$0xff] %vm65_vm0, %v268_v40 }
 0x229   :  { %275 = vsyncpa [#allocation3], 1 }

</bundles_post_ra>
